<compile_context>
chip_gen: v6e
topology: v6e:2x2x1
jax: 0.10.0
libtpu: 0.0.40
codegen_flags: <defaults>
</compile_context>

<pallas_src>
import functools
import math

import jax
import jax.numpy as jnp
from jax.experimental import pallas as pl
from jax.experimental.pallas import tpu as pltpu


_NEG_BIG = -1e30                  # padded logit columns -> exp() == 0 under softmax
_LANE = 128
_SUB = 16                         # bf16 sublane packing
_BUF_BUDGET = 40 * 1024 * 1024    # VMEM buffer budget (fits every TPU generation)
_VMEM_LIMIT = 48 * 1024 * 1024    # > v5e 16 MiB scoped default, < v7x 64 MiB physical
_MAX_W_TILE = 16 * 1024 * 1024    # cap on the resident weight tile's VMEM footprint


def _round_up(x, m):
    return ((x + m - 1) // m) * m


def gate_kernel(x_ref, w_ref, b_ref, o_ref, acc_ref, *, d_output):
    """One (batch-tile, K-tile) grid step of Linear -> softmax -> *d_output."""
    k = pl.program_id(1)

    @pl.when(k == 0)
    def _init():
        acc_ref[...] = jnp.zeros_like(acc_ref)

    # bf16 x bf16 -> f32 accumulation on the MXU.
    acc_ref[...] += jnp.dot(x_ref[...], w_ref[...],
                            preferred_element_type=jnp.float32)

    @pl.when(k == pl.num_programs(1) - 1)
    def _finalize():
        # Bias already carries 1/beta and the -1e30 pad columns.
        logits = acc_ref[...] + b_ref[...]
        m = jnp.max(logits, axis=-1, keepdims=True)
        e = jnp.exp(logits - m)
        s = jnp.sum(e, axis=-1, keepdims=True)
        # Fold the d_output scale into the [TB, 1] reciprocal (EUP approx path).
        scale = jnp.float32(d_output) * pl.reciprocal(s, approx=True)
        o_ref[...] = (e * scale).astype(o_ref.dtype)


def prepare_gate(weight, bias, *, beta=1.0, param_dtype=jnp.bfloat16):
    """One-time parameter transform (do NOT call per forward).

    weight: [d_out, d_in] (PyTorch nn.Linear layout), bias: [d_out].
    Transposes, folds 1/beta into W and b, pads to lane-dense shapes (-1e30 on
    padded logit columns), and casts the weight to the MXU dtype.
    """
    d_out, d_in = weight.shape
    d_in_p0 = _round_up(d_in, _LANE)
    d_out_p = _round_up(d_out, _LANE)
    w_isz = jnp.dtype(param_dtype).itemsize

    # Split d_in into K tiles only if the resident weight tile would be too big
    # (leaves VMEM headroom for large batch tiles; matters most on v7x 64 MiB/TC).
    nk = 1
    while True:
        tk = _round_up(-(-d_in_p0 // nk), _LANE)
        w_bufs = 1 if nk == 1 else 2          # double-buffered only when streamed over K
        if w_bufs * tk * d_out_p * w_isz <= _MAX_W_TILE or tk == _LANE:
            break
        nk += 1
    d_in_p = nk * tk

    inv_beta = 1.0 / float(beta)
    w_t = jnp.asarray(weight, jnp.float32).T * inv_beta          # [d_in, d_out] / beta
    w_p = jnp.pad(w_t, ((0, d_in_p - d_in), (0, d_out_p - d_out))).astype(param_dtype)
    b_p = jnp.pad((jnp.asarray(bias, jnp.float32) * inv_beta).reshape(1, d_out),
                  ((0, 0), (0, d_out_p - d_out)), constant_values=_NEG_BIG)
    return dict(w=w_p, b=b_p, d_in=d_in, d_out=d_out,
                d_in_p=d_in_p, d_out_p=d_out_p, tk=tk, nk=nk)


def gate_forward(x, params, *, out_dtype=None):
    """x: [B, d_in] -> [B, d_out] == d_out * softmax((x @ W.T + b) / beta)."""
    w, b = params["w"], params["b"]
    d_in, d_out = params["d_in"], params["d_out"]
    d_in_p, d_out_p = params["d_in_p"], params["d_out_p"]
    tk, nk = params["tk"], params["nk"]

    B = x.shape[0]
    assert x.shape[1] == d_in
    out_dtype = x.dtype if out_dtype is None else out_dtype

    x_isz = jnp.dtype(jnp.bfloat16).itemsize
    w_isz = w.dtype.itemsize
    out_isz = jnp.dtype(out_dtype).itemsize
    w_bufs = 1 if nk == 1 else 2

    def footprint(tb):
        return (2 * tb * tk * x_isz                 # x tiles (double-buffered, bf16)
                + w_bufs * tk * d_out_p * w_isz     # weight tile(s)
                + d_out_p * 4                       # bias
                + 2 * tb * d_out_p * out_isz        # output tiles (double-buffered)
                + tb * d_out_p * 4)                 # f32 accumulator scratch

    # Batch tile: minimise batch padding over MXU-friendly candidates.
    if B <= 128:
        tb = _round_up(B, _SUB)
    else:
        tb = min((512, 256, 128), key=lambda t: (_round_up(B, t), -t))
    # Shrink until the double-buffered working set fits the VMEM budget.
    while footprint(tb) > _BUF_BUDGET and tb > _SUB:
        tb = max(_SUB, _round_up(tb // 2, _SUB))
    B_p = _round_up(B, tb)
    # v7x: guarantee >= 2 steps on the "parallel" batch axis so both TCs get work.
    if B_p // tb == 1 and B_p >= 2 * _SUB:
        tb = _round_up((B_p + 1) // 2, _SUB)
        B_p = _round_up(B, tb)

    x_p = jnp.pad(x.astype(jnp.bfloat16), ((0, B_p - B), (0, d_in_p - d_in)))

    kernel = functools.partial(gate_kernel, d_output=d_out)
    grid = (B_p // tb, nk)

    buffered = getattr(pl, "Buffered", None)

    def _const_spec(shape, index_map):
        # Constant block index -> DMA once, single buffer (frees VMEM for bigger tb).
        if buffered is not None:
            return pl.BlockSpec(shape, index_map, pipeline_mode=buffered(1))
        return pl.BlockSpec(shape, index_map)

    if nk == 1:
        w_spec = _const_spec((tk, d_out_p), lambda i, k: (k, 0))
    else:
        w_spec = pl.BlockSpec((tk, d_out_p), lambda i, k: (k, 0))
    b_spec = _const_spec((1, d_out_p), lambda i, k: (0, 0))

    out_p = pl.pallas_call(
        kernel,
        out_shape=jax.ShapeDtypeStruct((B_p, d_out_p), out_dtype),
        grid_spec=pltpu.PrefetchScalarGridSpec(
            num_scalar_prefetch=0,
            grid=grid,
            in_specs=[
                pl.BlockSpec((tb, tk), lambda i, k: (i, k)),     # x: tiled over batch, K
                w_spec,                                          # weight
                b_spec,                                          # bias
            ],
            out_specs=pl.BlockSpec((tb, d_out_p), lambda i, k: (i, 0)),
            scratch_shapes=[pltpu.VMEM((tb, d_out_p), jnp.float32)],
        ),
        compiler_params=pltpu.CompilerParams(
            dimension_semantics=("parallel", "arbitrary"),
            vmem_limit_bytes=_VMEM_LIMIT),
        cost_estimate=pl.CostEstimate(
            flops=2 * B_p * d_in_p * d_out_p,
            transcendentals=B_p * d_out_p,
            bytes_accessed=(B_p * d_in_p * x_isz + d_in_p * d_out_p * w_isz
                            + d_out_p * 4 + B_p * d_out_p * out_isz)),
    )(x_p, w, b)

    return out_p[:B, :d_out]


def reference_gate(x, weight, bias, *, beta=1.0):
    """Pure-JAX reference: weight is [d_out, d_in] (PyTorch layout)."""
    d_out = weight.shape[0]
    logits = (x @ weight.T + bias) / beta
    return d_out * jax.nn.softmax(logits, axis=-1)


if __name__ == "__main__":
    key = jax.random.PRNGKey(0)
    k_x, k_w, k_b, k_x2, k_w2, k_b2 = jax.random.split(key, 6)

    # Case 1: Gate(d_input=32, d_output=64, beta=0.7), batch of 8.
    batch, d_input, d_output, beta = 8, 32, 64, 0.7
    bound = 1.0 / math.sqrt(d_input)
    weight = jax.random.uniform(k_w, (d_output, d_input), jnp.float32, -bound, bound)
    bias = jax.random.uniform(k_b, (d_output,), jnp.float32, -bound, bound)
    x = jax.random.normal(k_x, (batch, d_input), jnp.float32)

    params = prepare_gate(weight, bias, beta=beta)          # one-time transform
    out = jax.block_until_ready(gate_forward(x, params))
    ref = reference_gate(x, weight, bias, beta=beta)
    assert out.shape == (batch, d_output)
    # bf16 MXU operands + approx reciprocal -> ~1e-2-level tolerance
    assert jnp.allclose(out, ref, atol=2e-2, rtol=2e-2), \
        float(jnp.max(jnp.abs(out - ref)))

    # Case 2: non-aligned shapes exercise the padding / multi-tile batch paths.
    batch2, d_in2, d_out2 = 40, 100, 17
    bound2 = 1.0 / math.sqrt(d_in2)
    weight2 = jax.random.uniform(k_w2, (d_out2, d_in2), jnp.float32, -bound2, bound2)
    bias2 = jax.random.uniform(k_b2, (d_out2,), jnp.float32, -bound2, bound2)
    x2 = jax.random.normal(k_x2, (batch2, d_in2), jnp.float32)

    params2 = prepare_gate(weight2, bias2, beta=1.0)
    out2 = jax.block_until_ready(gate_forward(x2, params2))
    ref2 = reference_gate(x2, weight2, bias2, beta=1.0)
    assert out2.shape == (batch2, d_out2)
    assert jnp.allclose(out2, ref2, atol=2e-2, rtol=2e-2), \
        float(jnp.max(jnp.abs(out2 - ref2)))

    print("KERNEL_OK")
</pallas_src>

<mosaic_0001>
module attributes {stable_mosaic.version = 11 : i64} {
  func.func @gate_kernel(%arg0: i32, %arg1: i32, %arg2: memref<16x128xbf16, #tpu.memory_space<vmem>>, %arg3: memref<128x128xbf16, #tpu.memory_space<vmem>>, %arg4: memref<1x128xf32, #tpu.memory_space<vmem>>, %arg5: memref<16x128xf32, #tpu.memory_space<vmem>>, %arg6: memref<16x128xf32, #tpu.memory_space<vmem>>) attributes {dimension_semantics = [#tpu.dimension_semantics<parallel>, #tpu.dimension_semantics<arbitrary>], iteration_bounds = array<i64: 1, 1>, scalar_prefetch = 0 : i64, scratch_operands = 1 : i64, tpu.core_type = #tpu.core_type<tc>, window_params = [{transform_indices = @transform_0, window_bounds = array<i64: 16, 128>}, {pipeline_mode = #tpu.pipeline_mode<synchronous>, transform_indices = @transform_1, window_bounds = array<i64: 128, 128>}, {pipeline_mode = #tpu.pipeline_mode<synchronous>, transform_indices = @transform_2, window_bounds = array<i64: 1, 128>}, {transform_indices = @transform_3, window_bounds = array<i64: 16, 128>}]} {
    %c0_i32 = arith.constant 0 : i32
    %0 = arith.cmpi eq, %arg1, %c0_i32 : i32
    %1 = arith.extui %0 : i1 to i32
    %c0_i32_0 = arith.constant 0 : i32
    %2 = arith.cmpi ne, %1, %c0_i32_0 : i32
    scf.if %2 {
      %cst_10 = arith.constant 0.000000e+00 : f32
      %12 = vector.broadcast %cst_10 : f32 to vector<16x128xf32>
      %c0_11 = arith.constant 0 : index
      %c0_12 = arith.constant 0 : index
      %13 = vector.load %arg6[%c0_11, %c0_12] : memref<16x128xf32, #tpu.memory_space<vmem>>, vector<16x128xf32>
      tpu.vector_store %arg6[%c0_11, %c0_12], %12 {strides = array<i32>} : memref<16x128xf32, #tpu.memory_space<vmem>>, vector<16x128xf32>,
    } else {
    }
    %c0 = arith.constant 0 : index
    %c0_1 = arith.constant 0 : index
    %3 = vector.load %arg6[%c0, %c0_1] : memref<16x128xf32, #tpu.memory_space<vmem>>, vector<16x128xf32>
    %c0_2 = arith.constant 0 : index
    %c0_3 = arith.constant 0 : index
    %4 = vector.load %arg2[%c0_2, %c0_3] : memref<16x128xbf16, #tpu.memory_space<vmem>>, vector<16x128xbf16>
    %c0_4 = arith.constant 0 : index
    %c0_5 = arith.constant 0 : index
    %5 = vector.load %arg3[%c0_4, %c0_5] : memref<128x128xbf16, #tpu.memory_space<vmem>>, vector<128x128xbf16>
    %cst = arith.constant dense<0.000000e+00> : vector<16x128xf32>
    %6 = tpu.matmul %4, %5, %cst {dimension_numbers = #tpu.dot_dimension_numbers<[1], [0], [0], [1], [0, 0, 1, 1], [], []>} : vector<16x128xbf16>, vector<128x128xbf16>, vector<16x128xf32> -> vector<16x128xf32>
    %7 = arith.addf %3, %6 : vector<16x128xf32>
    %c0_6 = arith.constant 0 : index
    %c0_7 = arith.constant 0 : index
    %8 = vector.load %arg6[%c0_6, %c0_7] : memref<16x128xf32, #tpu.memory_space<vmem>>, vector<16x128xf32>
    tpu.vector_store %arg6[%c0_6, %c0_7], %7 {strides = array<i32>} : memref<16x128xf32, #tpu.memory_space<vmem>>, vector<16x128xf32>,
    %c0_i32_8 = arith.constant 0 : i32
    %9 = arith.cmpi eq, %arg1, %c0_i32_8 : i32
    %10 = arith.extui %9 : i1 to i32
    %c0_i32_9 = arith.constant 0 : i32
    %11 = arith.cmpi ne, %10, %c0_i32_9 : i32
    scf.if %11 {
      %c0_10 = arith.constant 0 : index
      %c0_11 = arith.constant 0 : index
      %12 = vector.load %arg6[%c0_10, %c0_11] : memref<16x128xf32, #tpu.memory_space<vmem>>, vector<16x128xf32>
      %c0_12 = arith.constant 0 : index
      %c0_13 = arith.constant 0 : index
      %13 = vector.load %arg4[%c0_12, %c0_13] : memref<1x128xf32, #tpu.memory_space<vmem>>, vector<1x128xf32>
      %14 = vector.broadcast %13 : vector<1x128xf32> to vector<16x128xf32>
      %15 = arith.addf %12, %14 : vector<16x128xf32>
      %cst_14 = arith.constant dense<0xFF800000> : vector<16xf32>
      %16 = vector.multi_reduction <maximumf>, %15, %cst_14 [1] : vector<16x128xf32> to vector<16xf32>
      %17 = vector.shape_cast %16 : vector<16xf32> to vector<16x1xf32>
      %18 = vector.broadcast %17 : vector<16x1xf32> to vector<16x128xf32>
      %19 = arith.subf %15, %18 : vector<16x128xf32>
      %20 = math.exp %19 : vector<16x128xf32>
      %cst_15 = arith.constant dense<0.000000e+00> : vector<16xf32>
      %21 = vector.multi_reduction <add>, %20, %cst_15 [1] : vector<16x128xf32> to vector<16xf32>
      %22 = vector.shape_cast %21 : vector<16xf32> to vector<16x1xf32>
      %23 = tpu.reciprocal %22 {approx = true} : vector<16x1xf32> -> vector<16x1xf32>
      %cst_16 = arith.constant 6.400000e+01 : f32
      %24 = vector.broadcast %cst_16 : f32 to vector<16x1xf32>
      %25 = arith.mulf %24, %23 : vector<16x1xf32>
      %26 = vector.broadcast %25 : vector<16x1xf32> to vector<16x128xf32>
      %27 = arith.mulf %20, %26 : vector<16x128xf32>
      %c0_17 = arith.constant 0 : index
      %c0_18 = arith.constant 0 : index
      %28 = vector.load %arg5[%c0_17, %c0_18] : memref<16x128xf32, #tpu.memory_space<vmem>>, vector<16x128xf32>
      tpu.vector_store %arg5[%c0_17, %c0_18], %27 {strides = array<i32>} : memref<16x128xf32, #tpu.memory_space<vmem>>, vector<16x128xf32>,
    } else {
    }
    return
  }
  func.func @transform_0(%arg0: i32, %arg1: i32) -> (i32, i32) {
    %c0_i32 = arith.constant 0 : i32
    return %arg0, %arg1 : i32, i32
  }
  func.func @transform_1(%arg0: i32, %arg1: i32) -> (i32, i32) {
    %c0_i32 = arith.constant 0 : i32
    %c0_i32_0 = arith.constant 0 : i32
    return %arg1, %c0_i32 : i32, i32
  }
  func.func @transform_2(%arg0: i32, %arg1: i32) -> (i32, i32) {
    %c0_i32 = arith.constant 0 : i32
    %c0_i32_0 = arith.constant 0 : i32
    %c0_i32_1 = arith.constant 0 : i32
    return %c0_i32, %c0_i32_0 : i32, i32
  }
  func.func @transform_3(%arg0: i32, %arg1: i32) -> (i32, i32) {
    %c0_i32 = arith.constant 0 : i32
    %c0_i32_0 = arith.constant 0 : i32
    return %arg0, %c0_i32 : i32, i32
  }
}

</mosaic_0001>

<bundles_post_ra>
// kernel: tpu_custom_call.1
= control target key start
LH: loop header
LB: loop body
LE: loop exit
PB: predicated region body
PF: predicated region fallthrough
CT: control target
= control target key end

     0   :  { %8 = vsyncpa [#allocation4], 0  ;;  %s395_s0 = inlined_call_operand.hbm [shape: bf16[16,128], index: 0, kind: input, shape index: {}]   ;;  %s396_s1 = inlined_call_operand.hbm [shape: bf16[128,128], index: 1, kind: input, shape index: {}]   ;;  %s397_s2 = inlined_call_operand.vmem [shape: f32[1,128], index: 2, kind: input, shape index: {}]   ;;  %s398_s3 = inlined_call_operand.hbm [shape: f32[16,128], index: 3, kind: output, shape index: {}]  }
   0x1   :  { %9 = vsyncpa [#allocation7], 0 }
   0x2   :  { %10 = vsyncpa [#allocation5], 0  ;;  %s354_s12 = smov [#allocation3]  }
   0x3   :  { %s16_s13 = sshll.u32 %s354_s12, 4  ;;  %s17_s13 = int_to_ptr.vmem [resolvable:$true] %s16_s13 }
   0x4   :  { %s296_s14 = scalar_lea.vmem %s17_s13, 128  ;;  %p301_p1 = scmp.lt.s32.totalorder %s17_s13, %s17_s13 }
   0x5   :  { %p297_p0 = scmp.ne.s32.totalorder %s17_s13, %s296_s14  ;;  %p302_p2 = scmp.lt.s32.totalorder %s296_s14, %s296_s14 }
   0x7   :  { %p303_p3 = por %p302_p2, %p301_p1 }
   0x9   :  { %p304_p4 = pnand %p303_p3, %p297_p0 }
   0xb   :  { %307 = shalt.err (!%p304_p4)
}
   0xc   :  { %s355_s15 = smov 64   ;;  %s356_s16 = smov 4  }
   0xd   :  { %22 = dma.hbm_to_vmem [thread:$0]  %s395_s0, 128, %s17_s13, [#allocation4], %s355_s15, %s355_s15, %s356_s16  }
   0xe   :  { %s357_s19 = smov [#allocation6]  }
   0xf   :  { %s28_s20 = sshll.u32 %s357_s19, 4  ;;  %s29_s20 = int_to_ptr.vmem [resolvable:$true] %s28_s20 }
  0x10   :  { %s316_s21 = scalar_lea.vmem %s29_s20, 1024  ;;  %p321_p6 = scmp.lt.s32.totalorder %s29_s20, %s29_s20 }
  0x11   :  { %p317_p5 = scmp.ne.s32.totalorder %s29_s20, %s316_s21  ;;  %p322_p7 = scmp.lt.s32.totalorder %s316_s21, %s316_s21 }
  0x13   :  { %p323_p8 = por %p322_p7, %p321_p6 }
  0x15   :  { %p324_p9 = pnand %p323_p8, %p317_p5 }
  0x17   :  { %327 = shalt.err (!%p324_p9)
}
  0x18   :  { %34 = dma.hbm_to_vmem [thread:$0]  %s396_s1, 1024, %s29_s20, [#allocation7], %s355_s15, %s355_s15, %s356_s16  }
  0x19   :  { %348 = dma.done.wait [#allocation4], 128  }
  0x1a   :  { %349 = vsyncadd [#allocation4], 4294967168 }
  0x1b   :  { %350 = dma.done.wait [#allocation7], 1024  }
  0x1c   :  { %351 = vsyncadd [#allocation7], 4294966272  ;;  %v358_v0 = vmov 0.0   ;;  %vm359_vm0 = vmmov 0   ;;  %v271_v1 = vld [vmem:[#allocation6 + $0x38] sm:$0xff]   ;;  %v272_v2 = vld [vmem:[#allocation6 + $0x30] sm:$0xff]  }
  0x1d   :  { %242 = vmatprep.subr.bf16.mxu0 %v358_v0  ;;  %258 = vmatprep.mubr.msk.bf16.mxu0 %vm359_vm0, %v358_v0  ;;  %v273_v3 = vld [vmem:[#allocation6 + $0x28] sm:$0xff]   ;;  %v274_v4 = vld [vmem:[#allocation6 + $0x20] sm:$0xff]   ;;  %v275_v5 = vld [vmem:[#allocation6 + $0x18] sm:$0xff]  }
  0x1e   :  { %243 = vmatpush3.bf16.msra.mxu0 %v271_v1  ;;  %v276_v6 = vld [vmem:[#allocation6 + $0x10] sm:$0xff]   ;;  %v277_v7 = vld [vmem:[#allocation6 + $0x8] sm:$0xff]   ;;  %v278_v8 = vld [vmem:[#allocation6] sm:$0xff]  }
  0x1f   :  { %244 = vmatprep.subr.bf16.mxu0 %v358_v0  ;;  %v279_v9 = vld [vmem:[#allocation3] sm:$0xff]  }
  0x20   :  { %v232_v10 = vld [vmem:[%s397_s2] ss:$0 sm:$0xff]  ;;  %s360_s2 = smov [#allocation8]  }
  0x21   :  { %s210_s24 = sshll.u32 %s360_s2, 4  ;;  %s211_s24 = int_to_ptr.vmem [resolvable:$true] %s210_s24 }
  0x22   :  { %245 = vmatpush3.bf16.msra.mxu0 %v272_v2  ;;  %s328_s25 = scalar_lea.vmem %s211_s24, 256  ;;  %p333_p11 = scmp.lt.s32.totalorder %s211_s24, %s211_s24 }
  0x23   :  { %246 = vmatprep.subr.bf16.mxu0 %v358_v0  ;;  %p329_p10 = scmp.ne.s32.totalorder %s211_s24, %s328_s25  ;;  %p334_p12 = scmp.lt.s32.totalorder %s328_s25, %s328_s25 }
  0x25   :  { %p335_p13 = por %p334_p12, %p333_p11 }
  0x26   :  { %247 = vmatpush3.bf16.msra.mxu0 %v273_v3 }
  0x27   :  { %248 = vmatprep.subr.bf16.mxu0 %v358_v0  ;;  %p336_p0 = pnand %p335_p13, %p329_p10 }
  0x2a   :  { %249 = vmatpush3.bf16.msra.mxu0 %v274_v4 }
  0x2b   :  { %250 = vmatprep.subr.bf16.mxu0 %v358_v0 }
  0x2e   :  { %251 = vmatpush3.bf16.msra.mxu0 %v275_v5 }
  0x2f   :  { %252 = vmatprep.subr.bf16.mxu0 %v358_v0 }
  0x32   :  { %253 = vmatpush3.bf16.msra.mxu0 %v276_v6 }
  0x33   :  { %254 = vmatprep.subr.bf16.mxu0 %v358_v0 }
  0x36   :  { %255 = vmatpush3.bf16.msra.mxu0 %v277_v7 }
  0x37   :  { %256 = vmatprep.subr.bf16.mxu0 %v358_v0 }
  0x3a   :  { %257 = vmatpush3.bf16.msra.mxu0 %v278_v8 }
  0x3d   :  { %259 = vmatmul.mubr.bf16.vlgmr.msra.gmra.mxu0 %v279_v9 }
  0xfd   :  { %v158_v11 = vpop.f32.mrf.mxu0 }
  0xfe   :  { %v181_v12 = vadd.f32 %v232_v10, %v158_v11 }
  0xff   :  { %v260_v13 = vpop.f32.mrf.mxu0 }
 0x100   :  { %183 = vmax.xlane.f32.xlu0 %v181_v12 }
 0x101   :  { %v161_v14 = vpop.f32.mrf.mxu0 }
 0x102   :  { %v182_v15 = vadd.f32 %v232_v10, %v161_v14 }
 0x103   :  { %v261_v16 = vpop.f32.mrf.mxu0 }
 0x104   :  { %185 = vmax.xlane.f32.xlu0 %v182_v15 }
 0x189   :  { %v184_v17 = vpop.xlane.xlu0 %183 }
 0x18a   :  { %v187_v18 = vsub.f32 %v181_v12, %v184_v17 }
 0x18c   :  { %v189_v19 = vmul.f32 1.442695, %v187_v18 }
 0x18d   :  { %v186_v20 = vpop.xlane.xlu0 %185 }
 0x18e   :  { %280 = vpow2.f32 %v189_v19  ;;  %v188_v21 = vsub.f32 %v182_v15, %v186_v20 }
 0x190   :  { %v191_v22 = vmul.f32 1.442695, %v188_v21 }
 0x192   :  { %282 = vpow2.f32 %v191_v22 }
 0x19b   :  { %v281_v23 = vpop.eup %280 }
 0x19c   :  { %193 = vadd.xlane.f32.xlu1 %v281_v23 }
 0x19f   :  { %v283_v24 = vpop.eup %282 }
 0x1a0   :  { %195 = vadd.xlane.f32.xlu1 %v283_v24 }
 0x225   :  { %v194_v25 = vpop.xlane.xlu1 %193 }
 0x226   :  { %284 = vrcp.f32 %v194_v25 }
 0x229   :  { %v196_v26 = vpop.xlane.xlu1 %195 }
 0x22a   :  { %286 = vrcp.f32 %v196_v26 }
 0x233   :  { %v285_v27 = vpop.eup %284 }
 0x234   :  { %v199_v28 = vmul.f32 64.0, %v285_v27 }
 0x236   :  { %v201_v29 = vmul.f32 %v281_v23, %v199_v28 }
 0x237   :  { %v287_v30 = vpop.eup %286 }
 0x238   :  { %203 = vst [vmem:[#allocation8] sm:$0xff] %v201_v29  ;;  %v200_v31 = vmul.f32 64.0, %v287_v30 }
 0x23a   :  { %v202_v32 = vmul.f32 %v283_v24, %v200_v31 }
 0x23c   :  { %204 = vst [vmem:[#allocation8 + $0x8] sm:$0xff] %v202_v32 }
 0x23d   :  { %339 = shalt.err (!%p336_p0)
}
 0x23e   :  { %s361_s26 = smov 128   ;;  %s362_s27 = smov 8  }
 0x23f   :  { %216 = dma.vmem_to_hbm [thread:$0]  %s211_s24, 256, %s398_s3, [#allocation5], %s361_s26, %s361_s26, %s362_s27  }
 0x240   :  { %352 = dma.done.wait [#allocation5], 256  }
 0x241   :  { %353 = vsyncadd [#allocation5], 4294967040 }
 0x242   :  { %220 = vsyncpa [#allocation4], 1 }
 0x243   :  { %221 = vsyncpa [#allocation7], 1 }
 0x244   :  { %222 = vsyncpa [#allocation5], 1 }

</bundles_post_ra>
